<compile_context>
chip_gen: v7x
topology: tpu7x:2x2x1
jax: 0.10.0
libtpu: 0.0.40
codegen_flags: <defaults>
</compile_context>

<pallas_src>
import functools

import jax
import jax.numpy as jnp
from jax.experimental import pallas as pl
from jax.experimental.pallas import tpu as pltpu


# ---------------------------------------------------------------------------
# Kernels
# ---------------------------------------------------------------------------
def _clip_resident_kernel(x_ref, wp_ref, bp_ref, w1_ref, b1_ref, w2_ref,
                          b2_ref, o_ref):
    """wp fully resident in VMEM: one fused step per M tile."""
    # Frozen encoder projection: bf16 operands, f32 accumulation (+ bias).
    enc = jnp.dot(x_ref[...].astype(jnp.bfloat16), wp_ref[...],
                  preferred_element_type=jnp.float32) + bp_ref[...]
    # Classifier head: Linear -> ReLU -> Linear.
    h = jnp.maximum(
        jnp.dot(enc.astype(jnp.bfloat16), w1_ref[...],
                preferred_element_type=jnp.float32) + b1_ref[...], 0.0)
    o_ref[...] = (jnp.dot(h.astype(jnp.bfloat16), w2_ref[...],
                          preferred_element_type=jnp.float32)
                  + b2_ref[...]).astype(o_ref.dtype)


def _clip_ktiled_kernel(x_ref, wp_ref, bp_ref, w1_ref, b1_ref, w2_ref,
                        b2_ref, o_ref, acc_ref):
    """wp streamed over a K grid axis; f32 accumulation in VMEM scratch."""
    k = pl.program_id(1)

    @pl.when(k == 0)
    def _init():
        # Fold the frozen-encoder bias into the accumulator init (free add).
        acc_ref[...] = jnp.broadcast_to(bp_ref[...], acc_ref.shape)

    acc_ref[...] += jnp.dot(x_ref[...].astype(jnp.bfloat16), wp_ref[...],
                            preferred_element_type=jnp.float32)

    @pl.when(k == pl.num_programs(1) - 1)
    def _finalize():
        enc = acc_ref[...].astype(jnp.bfloat16)
        h = jnp.maximum(
            jnp.dot(enc, w1_ref[...],
                    preferred_element_type=jnp.float32) + b1_ref[...], 0.0)
        o_ref[...] = (jnp.dot(h.astype(jnp.bfloat16), w2_ref[...],
                              preferred_element_type=jnp.float32)
                      + b2_ref[...]).astype(o_ref.dtype)


# ---------------------------------------------------------------------------
# Wrapper
# ---------------------------------------------------------------------------
def _pad_axis(a, axis, mult):
    pad = (-a.shape[axis]) % mult
    if pad == 0:
        return a
    widths = [(0, 0)] * a.ndim
    widths[axis] = (0, pad)
    return jnp.pad(a, widths)


def _vmem_capacity_bytes():
    try:
        return int(pltpu.get_tpu_info().vmem_capacity_bytes)
    except Exception:
        return 64 << 20   # conservative fallback (v7x-sized)


@functools.partial(jax.jit, static_argnames=("tm", "tk"))
def clip_classifier_forward(x_nchw, params, *, tm=256, tk=512):
    """x_nchw: (B, C, H, W) -> logits (B, num_classes) float32."""
    B = x_nchw.shape[0]
    x_flat = x_nchw.reshape(B, -1).astype(jnp.float32)   # plain-JAX glue
    d_in = x_flat.shape[1]

    # Frozen encoder + classifier weights in bf16 (weight-BW bound), biases f32.
    wp = params["wp"].astype(jnp.bfloat16)
    bp = params["bp"].astype(jnp.float32).reshape(1, -1)
    w1 = params["w1"].astype(jnp.bfloat16)
    b1 = params["b1"].astype(jnp.float32).reshape(1, -1)
    w2 = params["w2"].astype(jnp.bfloat16)
    b2 = params["b2"].astype(jnp.float32).reshape(1, -1)

    embed = wp.shape[1]
    hidden = w1.shape[1]
    num_classes = w2.shape[1]

    # Lane-dense output: pad num_classes up to a multiple of 128.
    ncp = 128 * pl.cdiv(num_classes, 128)
    w2_p = _pad_axis(w2, 1, 128)
    b2_p = _pad_axis(b2, 1, 128)

    # ---- tiling ----------------------------------------------------------
    vmem_budget = int(0.75 * _vmem_capacity_bytes())     # headroom for internals

    b_pad8 = 8 * pl.cdiv(B, 8)
    tm_eff = max(8, min(tm, b_pad8))                     # multiple of 8
    d_pad = 128 * pl.cdiv(d_in, 128)

    # Grid-invariant operands are single-buffered (pl.Buffered(1)).
    head_bytes = (embed * hidden * 2 + hidden * ncp * 2
                  + (embed + hidden + ncp) * 4)

    def _resident_need(tm_):
        return (d_pad * embed * 2            # wp, single-buffered
                + 2 * tm_ * d_pad * 4        # x tile (f32), double-buffered
                + 2 * tm_ * ncp * 4          # out tile, double-buffered
                + head_bytes)

    def _ktiled_need(tm_, tk_):
        return (2 * tm_ * tk_ * 4            # x tile (f32)
                + 2 * tk_ * embed * 2        # wp tile (bf16)
                + 2 * tm_ * ncp * 4          # out tile
                + tm_ * embed * 4            # f32 accumulator scratch
                + head_bytes)

    resident = _resident_need(tm_eff) <= vmem_budget

    if resident:
        b_pad = tm_eff * pl.cdiv(B, tm_eff)
        m_tiles = b_pad // tm_eff
        # v7x has 2 TensorCores: give the "parallel" M axis >= 2 tiles when the
        # batch allows it (free here: wp is not re-streamed on this path).
        if m_tiles == 1 and b_pad8 >= 16:
            tm_eff = 8 * pl.cdiv(pl.cdiv(b_pad8, 2), 8)
            b_pad = tm_eff * pl.cdiv(B, tm_eff)
            m_tiles = b_pad // tm_eff
        k_tiles = 1
        tk_eff = d_pad
    else:
        tk_eff = 128 * max(1, min(tk, d_pad) // 128)
        while _ktiled_need(tm_eff, tk_eff) > vmem_budget and tk_eff > 128:
            tk_eff = 128 * max(1, (tk_eff // 2) // 128)
        while _ktiled_need(tm_eff, tk_eff) > vmem_budget and tm_eff > 8:
            tm_eff = 8 * max(1, (tm_eff // 2) // 8)
        b_pad = tm_eff * pl.cdiv(B, tm_eff)
        m_tiles = b_pad // tm_eff
        d_pad = tk_eff * pl.cdiv(d_in, tk_eff)
        k_tiles = d_pad // tk_eff

    # Pad activations / encoder weight (zeros are inert in the reduction).
    x_p = jnp.pad(x_flat, ((0, b_pad - B), (0, d_pad - d_in)))
    wp_p = jnp.pad(wp, ((0, d_pad - d_in), (0, 0)))

    # ---- specs -----------------------------------------------------------
    if resident:
        kernel = _clip_resident_kernel
        grid = (m_tiles,)
        in_specs = [
            pl.BlockSpec((tm_eff, d_pad), lambda i: (i, 0)),               # x
            pl.BlockSpec((d_pad, embed), lambda i: (0, 0),
                         pipeline_mode=pl.Buffered(1)),                    # wp
            pl.BlockSpec((1, embed), lambda i: (0, 0),
                         pipeline_mode=pl.Buffered(1)),                    # bp
            pl.BlockSpec((embed, hidden), lambda i: (0, 0),
                         pipeline_mode=pl.Buffered(1)),                    # w1
            pl.BlockSpec((1, hidden), lambda i: (0, 0),
                         pipeline_mode=pl.Buffered(1)),                    # b1
            pl.BlockSpec((hidden, ncp), lambda i: (0, 0),
                         pipeline_mode=pl.Buffered(1)),                    # w2
            pl.BlockSpec((1, ncp), lambda i: (0, 0),
                         pipeline_mode=pl.Buffered(1)),                    # b2
        ]
        out_specs = pl.BlockSpec((tm_eff, ncp), lambda i: (i, 0))
        scratch_shapes = []
        dims = ("parallel",)
        vmem_needed = _resident_need(tm_eff)
        wp_hbm_reads = 1
    else:
        kernel = _clip_ktiled_kernel
        grid = (m_tiles, k_tiles)
        in_specs = [
            pl.BlockSpec((tm_eff, tk_eff), lambda i, k: (i, k)),           # x
            pl.BlockSpec((tk_eff, embed), lambda i, k: (k, 0)),            # wp
            pl.BlockSpec((1, embed), lambda i, k: (0, 0),
                         pipeline_mode=pl.Buffered(1)),                    # bp
            pl.BlockSpec((embed, hidden), lambda i, k: (0, 0),
                         pipeline_mode=pl.Buffered(1)),                    # w1
            pl.BlockSpec((1, hidden), lambda i, k: (0, 0),
                         pipeline_mode=pl.Buffered(1)),                    # b1
            pl.BlockSpec((hidden, ncp), lambda i, k: (0, 0),
                         pipeline_mode=pl.Buffered(1)),                    # w2
            pl.BlockSpec((1, ncp), lambda i, k: (0, 0),
                         pipeline_mode=pl.Buffered(1)),                    # b2
        ]
        out_specs = pl.BlockSpec((tm_eff, ncp), lambda i, k: (i, 0))
        scratch_shapes = [pltpu.VMEM((tm_eff, embed), jnp.float32)]
        dims = ("parallel", "arbitrary")
        vmem_needed = _ktiled_need(tm_eff, tk_eff)
        wp_hbm_reads = m_tiles        # wp is re-streamed once per M tile

    vmem_limit = int(min(max(vmem_needed * 5 // 4, 16 << 20), vmem_budget))

    flops = 2 * b_pad * (d_pad * embed + embed * hidden + hidden * ncp)
    bytes_accessed = (x_p.size * 4
                      + wp_p.size * 2 * wp_hbm_reads
                      + w1.size * 2 + w2_p.size * 2
                      + (embed + hidden + ncp) * 4
                      + b_pad * ncp * 4)

    out = pl.pallas_call(
        kernel,
        out_shape=jax.ShapeDtypeStruct((b_pad, ncp), jnp.float32),
        grid_spec=pltpu.PrefetchScalarGridSpec(
            num_scalar_prefetch=0,
            grid=grid,
            in_specs=in_specs,
            out_specs=out_specs,
            scratch_shapes=scratch_shapes),
        compiler_params=pltpu.CompilerParams(
            dimension_semantics=dims,
            vmem_limit_bytes=vmem_limit),
        cost_estimate=pl.CostEstimate(
            flops=int(flops), transcendentals=0,
            bytes_accessed=int(bytes_accessed)),
    )(x_p, wp_p, bp, w1, b1, w2_p, b2_p)

    return out[:B, :num_classes]


# ---------------------------------------------------------------------------
# Parameters (deterministic, PyTorch-default-like scaling)
# ---------------------------------------------------------------------------
def init_params(key, in_features, embed_dim, hidden, num_classes):
    ks = jax.random.split(key, 6)

    def lin(kw, kb, fan_in, fan_out):
        bound = 1.0 / jnp.sqrt(fan_in)
        w = jax.random.uniform(kw, (fan_in, fan_out), jnp.float32, -bound, bound)
        b = jax.random.uniform(kb, (1, fan_out), jnp.float32, -bound, bound)
        return w, b

    wp, bp = lin(ks[0], ks[1], in_features, embed_dim)   # frozen "encoder" proj
    w1, b1 = lin(ks[2], ks[3], embed_dim, hidden)        # classifier[0]
    w2, b2 = lin(ks[4], ks[5], hidden, num_classes)      # classifier[2]
    return {"wp": wp, "bp": bp, "w1": w1, "b1": b1, "w2": w2, "b2": b2}


if __name__ == "__main__":
    # Small shapes consistent with the forward pass:
    #   images (B=2, C=4, H=16, W=16) -> flatten 1024 -> encoder embed_dim=256
    #   classifier: Linear(256, 512) -> ReLU -> Linear(512, 16)
    B, C, H, W = 2, 4, 16, 16
    embed_dim, hidden, num_classes = 256, 512, 16
    in_features = C * H * W

    key = jax.random.PRNGKey(0)
    kx, kp = jax.random.split(key)
    x = jax.random.normal(kx, (B, C, H, W), dtype=jnp.float32)
    params = init_params(kp, in_features, embed_dim, hidden, num_classes)

    out = clip_classifier_forward(x, params)
    jax.block_until_ready(out)
    assert out.shape == (B, num_classes)

    # Reference with matching numerics (bf16 matmul operands, f32 accumulation).
    x_flat = x.reshape(B, -1)
    enc = jnp.dot(x_flat.astype(jnp.bfloat16),
                  params["wp"].astype(jnp.bfloat16),
                  preferred_element_type=jnp.float32) + params["bp"]
    h = jnp.maximum(
        jnp.dot(enc.astype(jnp.bfloat16), params["w1"].astype(jnp.bfloat16),
                preferred_element_type=jnp.float32) + params["b1"], 0.0)
    ref = jnp.dot(h.astype(jnp.bfloat16), params["w2"].astype(jnp.bfloat16),
                  preferred_element_type=jnp.float32) + params["b2"]

    assert jnp.allclose(out, ref, atol=1e-2, rtol=1e-2), (
        float(jnp.max(jnp.abs(out - ref))))

    print("KERNEL_OK")
</pallas_src>

<mosaic_0001>
module attributes {stable_mosaic.version = 11 : i64} {
  func.func @_clip_resident_kernel(%arg0: i32, %arg1: memref<8x1024xf32, #tpu.memory_space<vmem>>, %arg2: memref<1024x256xbf16, #tpu.memory_space<vmem>>, %arg3: memref<1x256xf32, #tpu.memory_space<vmem>>, %arg4: memref<256x512xbf16, #tpu.memory_space<vmem>>, %arg5: memref<1x512xf32, #tpu.memory_space<vmem>>, %arg6: memref<512x128xbf16, #tpu.memory_space<vmem>>, %arg7: memref<1x128xf32, #tpu.memory_space<vmem>>, %arg8: memref<8x128xf32, #tpu.memory_space<vmem>>) attributes {dimension_semantics = [#tpu.dimension_semantics<parallel>], iteration_bounds = array<i64: 1>, scalar_prefetch = 0 : i64, scratch_operands = 0 : i64, tpu.core_type = #tpu.core_type<tc>, window_params = [{transform_indices = @transform_0, window_bounds = array<i64: 8, 1024>}, {pipeline_mode = #tpu.pipeline_mode<synchronous>, transform_indices = @transform_1, window_bounds = array<i64: 1024, 256>}, {pipeline_mode = #tpu.pipeline_mode<synchronous>, transform_indices = @transform_2, window_bounds = array<i64: 1, 256>}, {pipeline_mode = #tpu.pipeline_mode<synchronous>, transform_indices = @transform_3, window_bounds = array<i64: 256, 512>}, {pipeline_mode = #tpu.pipeline_mode<synchronous>, transform_indices = @transform_4, window_bounds = array<i64: 1, 512>}, {pipeline_mode = #tpu.pipeline_mode<synchronous>, transform_indices = @transform_5, window_bounds = array<i64: 512, 128>}, {pipeline_mode = #tpu.pipeline_mode<synchronous>, transform_indices = @transform_6, window_bounds = array<i64: 1, 128>}, {transform_indices = @transform_7, window_bounds = array<i64: 8, 128>}]} {
    %c0 = arith.constant 0 : index
    %c0_0 = arith.constant 0 : index
    %0 = vector.load %arg1[%c0, %c0_0] : memref<8x1024xf32, #tpu.memory_space<vmem>>, vector<8x1024xf32>
    %1 = arith.truncf %0 : vector<8x1024xf32> to vector<8x1024xbf16>
    %c0_1 = arith.constant 0 : index
    %c0_2 = arith.constant 0 : index
    %2 = vector.load %arg2[%c0_1, %c0_2] : memref<1024x256xbf16, #tpu.memory_space<vmem>>, vector<1024x256xbf16>
    %cst = arith.constant dense<0.000000e+00> : vector<8x256xf32>
    %3 = tpu.matmul %1, %2, %cst {dimension_numbers = #tpu.dot_dimension_numbers<[1], [0], [0], [1], [0, 0, 1, 1], [], []>} : vector<8x1024xbf16>, vector<1024x256xbf16>, vector<8x256xf32> -> vector<8x256xf32>
    %c0_3 = arith.constant 0 : index
    %c0_4 = arith.constant 0 : index
    %4 = vector.load %arg3[%c0_3, %c0_4] : memref<1x256xf32, #tpu.memory_space<vmem>>, vector<1x256xf32>
    %5 = vector.broadcast %4 : vector<1x256xf32> to vector<8x256xf32>
    %6 = arith.addf %3, %5 : vector<8x256xf32>
    %7 = arith.truncf %6 : vector<8x256xf32> to vector<8x256xbf16>
    %c0_5 = arith.constant 0 : index
    %c0_6 = arith.constant 0 : index
    %8 = vector.load %arg4[%c0_5, %c0_6] : memref<256x512xbf16, #tpu.memory_space<vmem>>, vector<256x512xbf16>
    %cst_7 = arith.constant dense<0.000000e+00> : vector<8x512xf32>
    %9 = tpu.matmul %7, %8, %cst_7 {dimension_numbers = #tpu.dot_dimension_numbers<[1], [0], [0], [1], [0, 0, 1, 1], [], []>} : vector<8x256xbf16>, vector<256x512xbf16>, vector<8x512xf32> -> vector<8x512xf32>
    %c0_8 = arith.constant 0 : index
    %c0_9 = arith.constant 0 : index
    %10 = vector.load %arg5[%c0_8, %c0_9] : memref<1x512xf32, #tpu.memory_space<vmem>>, vector<1x512xf32>
    %11 = vector.broadcast %10 : vector<1x512xf32> to vector<8x512xf32>
    %12 = arith.addf %9, %11 : vector<8x512xf32>
    %cst_10 = arith.constant 0.000000e+00 : f32
    %13 = vector.broadcast %cst_10 : f32 to vector<8x512xf32>
    %14 = arith.maximumf %12, %13 : vector<8x512xf32>
    %15 = arith.truncf %14 : vector<8x512xf32> to vector<8x512xbf16>
    %c0_11 = arith.constant 0 : index
    %c0_12 = arith.constant 0 : index
    %16 = vector.load %arg6[%c0_11, %c0_12] : memref<512x128xbf16, #tpu.memory_space<vmem>>, vector<512x128xbf16>
    %cst_13 = arith.constant dense<0.000000e+00> : vector<8x128xf32>
    %17 = tpu.matmul %15, %16, %cst_13 {dimension_numbers = #tpu.dot_dimension_numbers<[1], [0], [0], [1], [0, 0, 1, 1], [], []>} : vector<8x512xbf16>, vector<512x128xbf16>, vector<8x128xf32> -> vector<8x128xf32>
    %c0_14 = arith.constant 0 : index
    %c0_15 = arith.constant 0 : index
    %18 = vector.load %arg7[%c0_14, %c0_15] : memref<1x128xf32, #tpu.memory_space<vmem>>, vector<1x128xf32>
    %19 = vector.broadcast %18 : vector<1x128xf32> to vector<8x128xf32>
    %20 = arith.addf %17, %19 : vector<8x128xf32>
    %c0_16 = arith.constant 0 : index
    %c0_17 = arith.constant 0 : index
    %21 = vector.load %arg8[%c0_16, %c0_17] : memref<8x128xf32, #tpu.memory_space<vmem>>, vector<8x128xf32>
    tpu.vector_store %arg8[%c0_16, %c0_17], %20 {strides = array<i32>} : memref<8x128xf32, #tpu.memory_space<vmem>>, vector<8x128xf32>,
    return
  }
  func.func @transform_0(%arg0: i32) -> (i32, i32) {
    %c0_i32 = arith.constant 0 : i32
    %c0_i32_0 = arith.constant 0 : i32
    return %arg0, %c0_i32 : i32, i32
  }
  func.func @transform_1(%arg0: i32) -> (i32, i32) {
    %c0_i32 = arith.constant 0 : i32
    %c0_i32_0 = arith.constant 0 : i32
    %c0_i32_1 = arith.constant 0 : i32
    return %c0_i32, %c0_i32_0 : i32, i32
  }
  func.func @transform_2(%arg0: i32) -> (i32, i32) {
    %c0_i32 = arith.constant 0 : i32
    %c0_i32_0 = arith.constant 0 : i32
    %c0_i32_1 = arith.constant 0 : i32
    return %c0_i32, %c0_i32_0 : i32, i32
  }
  func.func @transform_3(%arg0: i32) -> (i32, i32) {
    %c0_i32 = arith.constant 0 : i32
    %c0_i32_0 = arith.constant 0 : i32
    %c0_i32_1 = arith.constant 0 : i32
    return %c0_i32, %c0_i32_0 : i32, i32
  }
  func.func @transform_4(%arg0: i32) -> (i32, i32) {
    %c0_i32 = arith.constant 0 : i32
    %c0_i32_0 = arith.constant 0 : i32
    %c0_i32_1 = arith.constant 0 : i32
    return %c0_i32, %c0_i32_0 : i32, i32
  }
  func.func @transform_5(%arg0: i32) -> (i32, i32) {
    %c0_i32 = arith.constant 0 : i32
    %c0_i32_0 = arith.constant 0 : i32
    %c0_i32_1 = arith.constant 0 : i32
    return %c0_i32, %c0_i32_0 : i32, i32
  }
  func.func @transform_6(%arg0: i32) -> (i32, i32) {
    %c0_i32 = arith.constant 0 : i32
    %c0_i32_0 = arith.constant 0 : i32
    %c0_i32_1 = arith.constant 0 : i32
    return %c0_i32, %c0_i32_0 : i32, i32
  }
  func.func @transform_7(%arg0: i32) -> (i32, i32) {
    %c0_i32 = arith.constant 0 : i32
    %c0_i32_0 = arith.constant 0 : i32
    return %arg0, %c0_i32 : i32, i32
  }
}

</mosaic_0001>

<bundles_post_ra>
// kernel: clip_classifier_forward.1
= control target key start
LH: loop header
LB: loop body
LE: loop exit
PB: predicated region body
PF: predicated region fallthrough
CT: control target
= control target key end

     0   :  { %s3202_s1 = inlined_call_operand.vmem [shape: bf16[1024,256], index: 1, kind: input, shape index: {}]   ;;  %s3203_s0 = inlined_call_operand.vmem [shape: f32[8,1024], index: 0, kind: input, shape index: {}]   ;;  %s3204_s3 = inlined_call_operand.vmem [shape: bf16[256,512], index: 3, kind: input, shape index: {}]   ;;  %s3205_s5 = inlined_call_operand.vmem [shape: bf16[512,128], index: 5, kind: input, shape index: {}]   ;;  %s3206_s2 = inlined_call_operand.vmem [shape: f32[1,256], index: 2, kind: input, shape index: {}]   ;;  %s3207_s4 = inlined_call_operand.vmem [shape: f32[1,512], index: 4, kind: input, shape index: {}]   ;;  %s3208_s6 = inlined_call_operand.vmem [shape: f32[1,128], index: 6, kind: input, shape index: {}]   ;;  %s3209_s7 = inlined_call_operand.vmem [shape: f32[8,128], index: 7, kind: output, shape index: {}]  }
   0x1   :  { %v2116_v0 = vld [vmem:[%s3202_s1 + $0x4] ss:$8 sps:$4 sm:$0xff]   ;;  %v2118_v1 = vld [vmem:[%s3202_s1] ss:$8 sps:$4 sm:$0xff]   ;;  %v2119_v2 = vld [vmem:[%s3202_s1 + $0x14] ss:$8 sps:$4 sm:$0xff]  }
   0x2   :  { %823 = vmatprep.subr.bf16.mxu0 %v2116_v0  ;;  %v2121_v3 = vld [vmem:[%s3202_s1 + $0x10] ss:$8 sps:$4 sm:$0xff]   ;;  %v2122_v4 = vld [vmem:[%s3202_s1 + $0x24] ss:$8 sps:$4 sm:$0xff]   ;;  %v2124_v5 = vld [vmem:[%s3202_s1 + $0x20] ss:$8 sps:$4 sm:$0xff]  }
   0x3   :  { %824 = vmatpush1.bf16.msra.mxu0 %v2118_v1  ;;  %v2125_v6 = vld [vmem:[%s3202_s1 + $0x34] ss:$8 sps:$4 sm:$0xff]   ;;  %v2127_v7 = vld [vmem:[%s3202_s1 + $0x30] ss:$8 sps:$4 sm:$0xff]   ;;  %v2128_v8 = vld [vmem:[%s3202_s1 + $0x44] ss:$8 sps:$4 sm:$0xff]  }
   0x4   :  { %825 = vmatprep.subr.bf16.mxu0 %v2119_v2  ;;  %v2130_v9 = vld [vmem:[%s3202_s1 + $0x40] ss:$8 sps:$4 sm:$0xff]   ;;  %v2131_v10 = vld [vmem:[%s3202_s1 + $0x54] ss:$8 sps:$4 sm:$0xff]   ;;  %v2133_v11 = vld [vmem:[%s3202_s1 + $0x50] ss:$8 sps:$4 sm:$0xff]  }
   0x5   :  { %v2134_v12 = vld [vmem:[%s3202_s1 + $0x64] ss:$8 sps:$4 sm:$0xff]   ;;  %v2136_v15 = vld [vmem:[%s3202_s1 + $0x60] ss:$8 sps:$4 sm:$0xff]   ;;  %v2137_v16 = vld [vmem:[%s3202_s1 + $0x74] ss:$8 sps:$4 sm:$0xff]  }
   0x6   :  { %v28_v13 = vld [vmem:[%s3203_s0 + $0x8] sm:$0xff]  ;;  %v2139_v17 = vld [vmem:[%s3202_s1 + $0x70] ss:$8 sps:$4 sm:$0xff]   ;;  %v2143_v20 = vld [vmem:[%s3202_s1 + $0x94] ss:$8 sps:$4 sm:$0xff]  }
   0x7   :  { %826 = vmatpush1.bf16.msra.mxu0 %v2121_v3  ;;  %v36_v14 = vpack.c.bf16 %v28_v13, %v28_v13  ;;  %v2140_v18 = vld [vmem:[%s3202_s1 + $0x84] ss:$8 sps:$4 sm:$0xff]   ;;  %v2142_v19 = vld [vmem:[%s3202_s1 + $0x80] ss:$8 sps:$4 sm:$0xff]   ;;  %v2145_v21 = vld [vmem:[%s3202_s1 + $0x90] ss:$8 sps:$4 sm:$0xff]  }
   0x8   :  { %827 = vmatprep.subr.bf16.mxu0 %v2122_v4  ;;  %v2146_v22 = vld [vmem:[%s3202_s1 + $0xa4] ss:$8 sps:$4 sm:$0xff]   ;;  %v2148_v23 = vld [vmem:[%s3202_s1 + $0xa0] ss:$8 sps:$4 sm:$0xff]   ;;  %v2149_v24 = vld [vmem:[%s3202_s1 + $0xb4] ss:$8 sps:$4 sm:$0xff]  }
   0x9   :  { %855 = vmatprep.mubr.bf16.mxu0 %v36_v14  ;;  %v2151_v25 = vld [vmem:[%s3202_s1 + $0xb0] ss:$8 sps:$4 sm:$0xff]   ;;  %v2152_v26 = vld [vmem:[%s3202_s1 + $0xc4] ss:$8 sps:$4 sm:$0xff]   ;;  %v2154_v27 = vld [vmem:[%s3202_s1 + $0xc0] ss:$8 sps:$4 sm:$0xff]  }
   0xa   :  { %v2155_v28 = vld [vmem:[%s3202_s1 + $0xd4] ss:$8 sps:$4 sm:$0xff]   ;;  %v2157_v29 = vld [vmem:[%s3202_s1 + $0xd0] ss:$8 sps:$4 sm:$0xff]   ;;  %v2158_v30 = vld [vmem:[%s3202_s1 + $0xe4] ss:$8 sps:$4 sm:$0xff]  }
   0xb   :  { %828 = vmatpush1.bf16.msra.mxu0 %v2124_v5  ;;  %v2160_v31 = vld [vmem:[%s3202_s1 + $0xe0] ss:$8 sps:$4 sm:$0xff]   ;;  %v2161_v32 = vld [vmem:[%s3202_s1 + $0xf4] ss:$8 sps:$4 sm:$0xff]   ;;  %v2163_v33 = vld [vmem:[%s3202_s1 + $0xf0] ss:$8 sps:$4 sm:$0xff]  }
   0xc   :  { %829 = vmatprep.subr.bf16.mxu0 %v2125_v6  ;;  %v2166_v34 = vld [vmem:[%s3202_s1 + $0x104] ss:$8 sps:$4 sm:$0xff]   ;;  %v30_v36 = vld [vmem:[%s3203_s0 + $0x18] sm:$0xff]  ;;  %v2164_v38 = vld [vmem:[%s3202_s1 + $0x100] ss:$8 sps:$4 sm:$0xff]  }
   0xd   :  { %v27_v35 = vld [vmem:[%s3203_s0] sm:$0xff]  ;;  %v38_v39 = vpack.c.bf16 %v30_v36, %v30_v36  ;;  %v2169_v40 = vld [vmem:[%s3202_s1 + $0x114] ss:$8 sps:$4 sm:$0xff]   ;;  %v2167_v41 = vld [vmem:[%s3202_s1 + $0x110] ss:$8 sps:$4 sm:$0xff]  }
   0xe   :  { %v35_v37 = vpack.c.bf16 %v27_v35, %v27_v35  ;;  %v2172_v42 = vld [vmem:[%s3202_s1 + $0x124] ss:$8 sps:$4 sm:$0xff]   ;;  %v2170_v43 = vld [vmem:[%s3202_s1 + $0x120] ss:$8 sps:$4 sm:$0xff]   ;;  %v2175_v44 = vld [vmem:[%s3202_s1 + $0x134] ss:$8 sps:$4 sm:$0xff]  }
   0xf   :  { %830 = vmatpush1.bf16.msra.mxu0 %v2127_v7  ;;  %v2173_v45 = vld [vmem:[%s3202_s1 + $0x130] ss:$8 sps:$4 sm:$0xff]   ;;  %v2178_v46 = vld [vmem:[%s3202_s1 + $0x144] ss:$8 sps:$4 sm:$0xff]   ;;  %v2176_v47 = vld [vmem:[%s3202_s1 + $0x140] ss:$8 sps:$4 sm:$0xff]  }
  0x10   :  { %831 = vmatprep.subr.bf16.mxu0 %v2128_v8  ;;  %v2181_v48 = vld [vmem:[%s3202_s1 + $0x154] ss:$8 sps:$4 sm:$0xff]   ;;  %v2179_v49 = vld [vmem:[%s3202_s1 + $0x150] ss:$8 sps:$4 sm:$0xff]   ;;  %v2184_v50 = vld [vmem:[%s3202_s1 + $0x164] ss:$8 sps:$4 sm:$0xff]  }
  0x11   :  { %v2182_v51 = vld [vmem:[%s3202_s1 + $0x160] ss:$8 sps:$4 sm:$0xff]   ;;  %v2187_v52 = vld [vmem:[%s3202_s1 + $0x174] ss:$8 sps:$4 sm:$0xff]   ;;  %v2185_v53 = vld [vmem:[%s3202_s1 + $0x170] ss:$8 sps:$4 sm:$0xff]  }
  0x12   :  { %v2190_v54 = vld [vmem:[%s3202_s1 + $0x184] ss:$8 sps:$4 sm:$0xff]   ;;  %v2188_v55 = vld [vmem:[%s3202_s1 + $0x180] ss:$8 sps:$4 sm:$0xff]   ;;  %v2193_v56 = vld [vmem:[%s3202_s1 + $0x194] ss:$8 sps:$4 sm:$0xff]  }
  0x13   :  { %832 = vmatpush1.bf16.msra.mxu0 %v2130_v9  ;;  %v2191_v57 = vld [vmem:[%s3202_s1 + $0x190] ss:$8 sps:$4 sm:$0xff]   ;;  %v2196_v58 = vld [vmem:[%s3202_s1 + $0x1a4] ss:$8 sps:$4 sm:$0xff]   ;;  %v2194_v59 = vld [vmem:[%s3202_s1 + $0x1a0] ss:$8 sps:$4 sm:$0xff]  }
  0x14   :  { %833 = vmatprep.subr.bf16.mxu0 %v2131_v10  ;;  %v2199_v60 = vld [vmem:[%s3202_s1 + $0x1b4] ss:$8 sps:$4 sm:$0xff]   ;;  %v2197_v61 = vld [vmem:[%s3202_s1 + $0x1b0] ss:$8 sps:$4 sm:$0xff]   ;;  %v2202_v62 = vld [vmem:[%s3202_s1 + $0x1c4] ss:$8 sps:$4 sm:$0xff]  }
  0x15   :  { %v2200_v63 = vld [vmem:[%s3202_s1 + $0x1c0] ss:$8 sps:$4 sm:$0xff]   ;;  %v2205_v0 = vld [vmem:[%s3202_s1 + $0x1d4] ss:$8 sps:$4 sm:$0xff]   ;;  %v2203_v1 = vld [vmem:[%s3202_s1 + $0x1d0] ss:$8 sps:$4 sm:$0xff]  }
  0x16   :  { %v2208_v2 = vld [vmem:[%s3202_s1 + $0x1e4] ss:$8 sps:$4 sm:$0xff]   ;;  %v2206_v3 = vld [vmem:[%s3202_s1 + $0x1e0] ss:$8 sps:$4 sm:$0xff]   ;;  %v2211_v4 = vld [vmem:[%s3202_s1 + $0x1f4] ss:$8 sps:$4 sm:$0xff]  }
  0x17   :  { %834 = vmatpush1.bf16.msra.mxu0 %v2133_v11  ;;  %v2209_v5 = vld [vmem:[%s3202_s1 + $0x1f0] ss:$8 sps:$4 sm:$0xff]   ;;  %v2214_v7 = vld [vmem:[%s3202_s1 + $0x204] ss:$8 sps:$4 sm:$0xff]   ;;  %v2212_v10 = vld [vmem:[%s3202_s1 + $0x200] ss:$8 sps:$4 sm:$0xff]  }
  0x18   :  { %835 = vmatprep.subr.bf16.mxu0 %v2134_v12  ;;  %v29_v6 = vld [vmem:[%s3203_s0 + $0x10] sm:$0xff]  ;;  %v32_v8 = vld [vmem:[%s3203_s0 + $0x28] sm:$0xff] }
  0x19   :  { %v37_v9 = vpack.c.bf16 %v29_v6, %v29_v6  ;;  %v40_v11 = vpack.c.bf16 %v32_v8, %v32_v8  ;;  %v2217_v12 = vld [vmem:[%s3202_s1 + $0x214] ss:$8 sps:$4 sm:$0xff]   ;;  %v2215_v13 = vld [vmem:[%s3202_s1 + $0x210] ss:$8 sps:$4 sm:$0xff]   ;;  %v2220_v14 = vld [vmem:[%s3202_s1 + $0x224] ss:$8 sps:$4 sm:$0xff]  }
  0x1a   :  { %v2235_v35 = vld [vmem:[%s3202_s1 + $0x274] ss:$8 sps:$4 sm:$0xff]   ;;  %v2325_v36 = vld [vmem:[%s3204_s3 + $0xa0] ss:$16 sps:$4 sm:$0xff]  }
  0x1b   :  { %836 = vmatpush1.bf16.msra.mxu0 %v2136_v15  ;;  %v2308_v15 = vld [vmem:[%s3204_s3 + $0x4] ss:$16 sps:$4 sm:$0xff]   ;;  %v2352_v6 = vld [vmem:[%s3204_s3 + $0x1c0] ss:$16 sps:$4 sm:$0xff]  }
  0x1c   :  { %837 = vmatprep.subr.bf16.mxu0 %v2137_v16  ;;  %v2310_v16 = vld [vmem:[%s3204_s3] ss:$16 sps:$4 sm:$0xff]   ;;  %1395 = vmatprep.subr.bf16.mxu1 %v2308_v15 }
  0x1d   :  { %1396 = vmatpush1.bf16.msra.mxu1 %v2310_v16  ;;  %v31_v8 = vld [vmem:[%s3203_s0 + $0x20] sm:$0xff]  ;;  %v2263_v15 = vld [vmem:[%s3202_s1 + $0x310] ss:$8 sps:$4 sm:$0xff]  }
  0x1e   :  { %v2268_v16 = vld [vmem:[%s3202_s1 + $0x324] ss:$8 sps:$4 sm:$0xff]  }
  0x1f   :  { %838 = vmatpush1.bf16.msra.mxu0 %v2139_v17  ;;  %v2311_v17 = vld [vmem:[%s3204_s3 + $0x24] ss:$16 sps:$4 sm:$0xff]  }
  0x20   :  { %839 = vmatprep.subr.bf16.mxu0 %v2140_v18  ;;  %v2218_v18 = vld [vmem:[%s3202_s1 + $0x220] ss:$8 sps:$4 sm:$0xff]   ;;  %1397 = vmatprep.subr.bf16.mxu1 %v2311_v17 }
  0x21   :  { %v2266_v17 = vld [vmem:[%s3202_s1 + $0x320] ss:$8 sps:$4 sm:$0xff]  }
  0x23   :  { %840 = vmatpush1.bf16.msra.mxu0 %v2142_v19  ;;  %v2313_v19 = vld [vmem:[%s3204_s3 + $0x20] ss:$16 sps:$4 sm:$0xff]  }
  0x24   :  { %841 = vmatprep.subr.bf16.mxu0 %v2143_v20  ;;  %v2314_v20 = vld [vmem:[%s3204_s3 + $0x44] ss:$16 sps:$4 sm:$0xff]   ;;  %1398 = vmatpush1.bf16.msra.mxu1 %v2313_v19  ;;  %v2269_v19 = vld [vmem:[%s3202_s1 + $0x330] ss:$8 sps:$4 sm:$0xff]  }
  0x25   :  { %1399 = vmatprep.subr.bf16.mxu1 %v2314_v20  ;;  %v2274_v20 = vld [vmem:[%s3202_s1 + $0x344] ss:$8 sps:$4 sm:$0xff]  }
  0x27   :  { %842 = vmatpush1.bf16.msra.mxu0 %v2145_v21  ;;  %v2223_v21 = vld [vmem:[%s3202_s1 + $0x234] ss:$8 sps:$4 sm:$0xff]  }
  0x28   :  { %843 = vmatprep.subr.bf16.mxu0 %v2146_v22  ;;  %v2221_v22 = vld [vmem:[%s3202_s1 + $0x230] ss:$8 sps:$4 sm:$0xff]  }
  0x2b   :  { %844 = vmatpush1.bf16.msra.mxu0 %v2148_v23  ;;  %v2316_v23 = vld [vmem:[%s3204_s3 + $0x40] ss:$16 sps:$4 sm:$0xff]  }
  0x2c   :  { %845 = vmatprep.subr.bf16.mxu0 %v2149_v24  ;;  %v2317_v24 = vld [vmem:[%s3204_s3 + $0x64] ss:$16 sps:$4 sm:$0xff]   ;;  %1400 = vmatpush1.bf16.msra.mxu1 %v2316_v23  ;;  %v2275_v23 = vld [vmem:[%s3202_s1 + $0x350] ss:$8 sps:$4 sm:$0xff]  }
  0x2d   :  { %1401 = vmatprep.subr.bf16.mxu1 %v2317_v24  ;;  %v2280_v24 = vld [vmem:[%s3202_s1 + $0x364] ss:$8 sps:$4 sm:$0xff]  }
  0x2f   :  { %846 = vmatpush1.bf16.msra.mxu0 %v2151_v25  ;;  %v2226_v25 = vld [vmem:[%s3202_s1 + $0x244] ss:$8 sps:$4 sm:$0xff]  }
  0x30   :  { %847 = vmatprep.subr.bf16.mxu0 %v2152_v26  ;;  %v2224_v26 = vld [vmem:[%s3202_s1 + $0x240] ss:$8 sps:$4 sm:$0xff]  }
  0x33   :  { %848 = vmatpush1.bf16.msra.mxu0 %v2154_v27  ;;  %v2319_v27 = vld [vmem:[%s3204_s3 + $0x60] ss:$16 sps:$4 sm:$0xff]  }
  0x34   :  { %849 = vmatprep.subr.bf16.mxu0 %v2155_v28  ;;  %v2320_v28 = vld [vmem:[%s3204_s3 + $0x84] ss:$16 sps:$4 sm:$0xff]   ;;  %1402 = vmatpush1.bf16.msra.mxu1 %v2319_v27  ;;  %v2281_v27 = vld [vmem:[%s3202_s1 + $0x370] ss:$8 sps:$4 sm:$0xff]  }
  0x35   :  { %1403 = vmatprep.subr.bf16.mxu1 %v2320_v28  ;;  %v2286_v28 = vld [vmem:[%s3202_s1 + $0x384] ss:$8 sps:$4 sm:$0xff]  }
  0x37   :  { %850 = vmatpush1.bf16.msra.mxu0 %v2157_v29  ;;  %v2229_v29 = vld [vmem:[%s3202_s1 + $0x254] ss:$8 sps:$4 sm:$0xff]  }
  0x38   :  { %851 = vmatprep.subr.bf16.mxu0 %v2158_v30  ;;  %v2227_v30 = vld [vmem:[%s3202_s1 + $0x250] ss:$8 sps:$4 sm:$0xff]  }
  0x3b   :  { %852 = vmatpush1.bf16.msra.mxu0 %v2160_v31  ;;  %v2322_v31 = vld [vmem:[%s3204_s3 + $0x80] ss:$16 sps:$4 sm:$0xff]  }
  0x3c   :  { %853 = vmatprep.subr.bf16.mxu0 %v2161_v32  ;;  %v2323_v32 = vld [vmem:[%s3204_s3 + $0xa4] ss:$16 sps:$4 sm:$0xff]   ;;  %1404 = vmatpush1.bf16.msra.mxu1 %v2322_v31  ;;  %v2287_v31 = vld [vmem:[%s3202_s1 + $0x390] ss:$8 sps:$4 sm:$0xff]  }
  0x3d   :  { %1405 = vmatprep.subr.bf16.mxu1 %v2323_v32  ;;  %v2292_v32 = vld [vmem:[%s3202_s1 + $0x3a4] ss:$8 sps:$4 sm:$0xff]  }
  0x3f   :  { %854 = vmatpush1.bf16.msra.mxu0 %v2163_v33  ;;  %v2232_v33 = vld [vmem:[%s3202_s1 + $0x264] ss:$8 sps:$4 sm:$0xff]  }
  0x40   :  { %864 = vmatprep.subr.bf16.mxu0 %v2166_v34  ;;  %v2230_v34 = vld [vmem:[%s3202_s1 + $0x260] ss:$8 sps:$4 sm:$0xff]   ;;  %1406 = vmatpush1.bf16.msra.mxu1 %v2325_v36  ;;  %v2298_v36 = vld [vmem:[%s3202_s1 + $0x3c4] ss:$8 sps:$4 sm:$0xff]  }
  0x42   :  { %856 = vmatmul.mubr.bf16.vlgmr.msra.gmra.mrb[0].mxu0 %v35_v37  ;;  %v2326_v37 = vld [vmem:[%s3204_s3 + $0xc4] ss:$16 sps:$4 sm:$0xff]  }
  0x43   :  { %865 = vmatpush1.bf16.msra.mxu0 %v2164_v38  ;;  %896 = vmatprep.mubr.bf16.mxu0 %v38_v39  ;;  %v2328_v38 = vld [vmem:[%s3204_s3 + $0xc0] ss:$16 sps:$4 sm:$0xff]  }
  0x44   :  { %866 = vmatprep.subr.bf16.mxu0 %v2169_v40  ;;  %v2233_v39 = vld [vmem:[%s3202_s1 + $0x270] ss:$8 sps:$4 sm:$0xff]   ;;  %v2329_v40 = vld [vmem:[%s3204_s3 + $0xe4] ss:$16 sps:$4 sm:$0xff]   ;;  %1407 = vmatprep.subr.bf16.mxu1 %v2326_v37  ;;  %v2296_v37 = vld [vmem:[%s3202_s1 + $0x3c0] ss:$8 sps:$4 sm:$0xff]  }
  0x45   :  { %1408 = vmatpush1.bf16.msra.mxu1 %v2328_v38  ;;  %v2301_v38 = vld [vmem:[%s3202_s1 + $0x3d4] ss:$8 sps:$4 sm:$0xff]  }
  0x46   :  { %1409 = vmatprep.subr.bf16.mxu1 %v2329_v40  ;;  %v2304_v40 = vld [vmem:[%s3202_s1 + $0x3e4] ss:$8 sps:$4 sm:$0xff]  }
  0x47   :  { %867 = vmatpush1.bf16.msra.mxu0 %v2167_v41  ;;  %v2238_v41 = vld [vmem:[%s3202_s1 + $0x284] ss:$8 sps:$4 sm:$0xff]  }
  0x48   :  { %868 = vmatprep.subr.bf16.mxu0 %v2172_v42  ;;  %v2331_v42 = vld [vmem:[%s3204_s3 + $0xe0] ss:$16 sps:$4 sm:$0xff]  }
  0x49   :  { %1410 = vmatpush1.bf16.msra.mxu1 %v2331_v42  ;;  %v2307_v42 = vld [vmem:[%s3202_s1 + $0x3f4] ss:$8 sps:$4 sm:$0xff]  }
  0x4b   :  { %869 = vmatpush1.bf16.msra.mxu0 %v2170_v43  ;;  %v2236_v43 = vld [vmem:[%s3202_s1 + $0x280] ss:$8 sps:$4 sm:$0xff]  }
  0x4c   :  { %870 = vmatprep.subr.bf16.mxu0 %v2175_v44  ;;  %v2332_v44 = vld [vmem:[%s3204_s3 + $0x104] ss:$16 sps:$4 sm:$0xff]  }
  0x4d   :  { %1411 = vmatprep.subr.bf16.mxu1 %v2332_v44  ;;  %v33_v44 = vld [vmem:[%s3203_s0 + $0x30] sm:$0xff] }
  0x4f   :  { %871 = vmatpush1.bf16.msra.mxu0 %v2173_v45  ;;  %v2241_v45 = vld [vmem:[%s3202_s1 + $0x294] ss:$8 sps:$4 sm:$0xff]  }
  0x50   :  { %872 = vmatprep.subr.bf16.mxu0 %v2178_v46  ;;  %v2334_v46 = vld [vmem:[%s3204_s3 + $0x100] ss:$16 sps:$4 sm:$0xff]  }
  0x51   :  { %1412 = vmatpush1.bf16.msra.mxu1 %v2334_v46  ;;  %v2353_v46 = vld [vmem:[%s3204_s3 + $0x1e4] ss:$16 sps:$4 sm:$0xff]  }
  0x53   :  { %873 = vmatpush1.bf16.msra.mxu0 %v2176_v47  ;;  %v2239_v47 = vld [vmem:[%s3202_s1 + $0x290] ss:$8 sps:$4 sm:$0xff]  }
  0x54   :  { %874 = vmatprep.subr.bf16.mxu0 %v2181_v48  ;;  %v2335_v48 = vld [vmem:[%s3204_s3 + $0x124] ss:$16 sps:$4 sm:$0xff]  }
  0x55   :  { %1413 = vmatprep.subr.bf16.mxu1 %v2335_v48  ;;  %v2358_v48 = vld [vmem:[%s3204_s3 + $0xc] ss:$16 sps:$4 sm:$0xff]  }
  0x57   :  { %875 = vmatpush1.bf16.msra.mxu0 %v2179_v49  ;;  %v2244_v49 = vld [vmem:[%s3202_s1 + $0x2a4] ss:$8 sps:$4 sm:$0xff]  }
  0x58   :  { %876 = vmatprep.subr.bf16.mxu0 %v2184_v50  ;;  %v2337_v50 = vld [vmem:[%s3204_s3 + $0x120] ss:$16 sps:$4 sm:$0xff]  }
  0x59   :  { %1414 = vmatpush1.bf16.msra.mxu1 %v2337_v50 }
  0x5b   :  { %877 = vmatpush1.bf16.msra.mxu0 %v2182_v51  ;;  %v2242_v51 = vld [vmem:[%s3202_s1 + $0x2a0] ss:$8 sps:$4 sm:$0xff]  }
  0x5c   :  { %878 = vmatprep.subr.bf16.mxu0 %v2187_v52  ;;  %v2338_v52 = vld [vmem:[%s3204_s3 + $0x144] ss:$16 sps:$4 sm:$0xff]  }
  0x5d   :  { %1415 = vmatprep.subr.bf16.mxu1 %v2338_v52  ;;  %v171_v52 = vld [vmem:[%s3206_s2] sm:$0x3] }
  0x5f   :  { %879 = vmatpush1.bf16.msra.mxu0 %v2185_v53  ;;  %v2247_v53 = vld [vmem:[%s3202_s1 + $0x2b4] ss:$8 sps:$4 sm:$0xff]  }
  0x60   :  { %880 = vmatprep.subr.bf16.mxu0 %v2190_v54  ;;  %v2340_v54 = vld [vmem:[%s3204_s3 + $0x140] ss:$16 sps:$4 sm:$0xff]  }
  0x61   :  { %1416 = vmatpush1.bf16.msra.mxu1 %v2340_v54 }
  0x63   :  { %881 = vmatpush1.bf16.msra.mxu0 %v2188_v55  ;;  %v2245_v55 = vld [vmem:[%s3202_s1 + $0x2b0] ss:$8 sps:$4 sm:$0xff]  }
  0x64   :  { %882 = vmatprep.subr.bf16.mxu0 %v2193_v56  ;;  %v2341_v56 = vld [vmem:[%s3204_s3 + $0x164] ss:$16 sps:$4 sm:$0xff]  }
  0x65   :  { %1417 = vmatprep.subr.bf16.mxu1 %v2341_v56 }
  0x67   :  { %883 = vmatpush1.bf16.msra.mxu0 %v2191_v57  ;;  %v2250_v57 = vld [vmem:[%s3202_s1 + $0x2c4] ss:$8 sps:$4 sm:$0xff]  }
  0x68   :  { %884 = vmatprep.subr.bf16.mxu0 %v2196_v58  ;;  %v2343_v58 = vld [vmem:[%s3204_s3 + $0x160] ss:$16 sps:$4 sm:$0xff]  }
  0x69   :  { %1418 = vmatpush1.bf16.msra.mxu1 %v2343_v58 }
  0x6b   :  { %885 = vmatpush1.bf16.msra.mxu0 %v2194_v59  ;;  %v2248_v59 = vld [vmem:[%s3202_s1 + $0x2c0] ss:$8 sps:$4 sm:$0xff]  }
  0x6c   :  { %886 = vmatprep.subr.bf16.mxu0 %v2199_v60  ;;  %v2344_v60 = vld [vmem:[%s3204_s3 + $0x184] ss:$16 sps:$4 sm:$0xff]  }
  0x6d   :  { %1419 = vmatprep.subr.bf16.mxu1 %v2344_v60 }
  0x6f   :  { %887 = vmatpush1.bf16.msra.mxu0 %v2197_v61  ;;  %v2253_v61 = vld [vmem:[%s3202_s1 + $0x2d4] ss:$8 sps:$4 sm:$0xff]  }
  0x70   :  { %888 = vmatprep.subr.bf16.mxu0 %v2202_v62  ;;  %v2346_v62 = vld [vmem:[%s3204_s3 + $0x180] ss:$16 sps:$4 sm:$0xff]  }
  0x71   :  { %1420 = vmatpush1.bf16.msra.mxu1 %v2346_v62 }
  0x73   :  { %889 = vmatpush1.bf16.msra.mxu0 %v2200_v63  ;;  %v2251_v63 = vld [vmem:[%s3202_s1 + $0x2d0] ss:$8 sps:$4 sm:$0xff]  }
  0x74   :  { %890 = vmatprep.subr.bf16.mxu0 %v2205_v0  ;;  %v2347_v0 = vld [vmem:[%s3204_s3 + $0x1a4] ss:$16 sps:$4 sm:$0xff]  }
  0x75   :  { %1421 = vmatprep.subr.bf16.mxu1 %v2347_v0 }
  0x77   :  { %891 = vmatpush1.bf16.msra.mxu0 %v2203_v1  ;;  %v2256_v1 = vld [vmem:[%s3202_s1 + $0x2e4] ss:$8 sps:$4 sm:$0xff]  }
  0x78   :  { %892 = vmatprep.subr.bf16.mxu0 %v2208_v2  ;;  %v2349_v2 = vld [vmem:[%s3204_s3 + $0x1a0] ss:$16 sps:$4 sm:$0xff]  }
  0x79   :  { %1422 = vmatpush1.bf16.msra.mxu1 %v2349_v2  ;;  %v2359_v2 = vld [vmem:[%s3204_s3 + $0x28] ss:$16 sps:$4 sm:$0xff]  }
  0x7b   :  { %893 = vmatpush1.bf16.msra.mxu0 %v2206_v3  ;;  %v2254_v3 = vld [vmem:[%s3202_s1 + $0x2e0] ss:$8 sps:$4 sm:$0xff]  }
  0x7c   :  { %894 = vmatprep.subr.bf16.mxu0 %v2211_v4  ;;  %v2350_v4 = vld [vmem:[%s3204_s3 + $0x1c4] ss:$16 sps:$4 sm:$0xff]  }
  0x7d   :  { %1423 = vmatprep.subr.bf16.mxu1 %v2350_v4  ;;  %v2362_v4 = vld [vmem:[%s3204_s3 + $0x48] ss:$16 sps:$4 sm:$0xff]  }
  0x7e   :  { %1424 = vmatpush1.bf16.msra.mxu1 %v2352_v6  ;;  %v2365_v6 = vld [vmem:[%s3204_s3 + $0x68] ss:$16 sps:$4 sm:$0xff]  }
  0x7f   :  { %895 = vmatpush1.bf16.msra.mxu0 %v2209_v5  ;;  %v2259_v5 = vld [vmem:[%s3202_s1 + $0x2f4] ss:$8 sps:$4 sm:$0xff]   ;;  %1425 = vmatprep.subr.bf16.mxu1 %v2353_v46 }
  0x80   :  { %905 = vmatprep.subr.bf16.mxu0 %v2214_v7  ;;  %v2257_v7 = vld [vmem:[%s3202_s1 + $0x2f0] ss:$8 sps:$4 sm:$0xff]  }
  0x81   :  { %v2419_v46 = vld [vmem:[%s3205_s5 + $0x38] sm:$0xff]  }
  0x82   :  { %897 = vmatmul.mubr.bf16.vlgmr.msra.gmra.mrb[0].mxu0 %v37_v9  ;;  %v2262_v9 = vld [vmem:[%s3202_s1 + $0x304] ss:$8 sps:$4 sm:$0xff]  }
  0x83   :  { %906 = vmatpush1.bf16.msra.mxu0 %v2212_v10  ;;  %937 = vmatprep.mubr.bf16.mxu0 %v40_v11  ;;  %v34_v10 = vld [vmem:[%s3203_s0 + $0x38] sm:$0xff]  ;;  %v39_v11 = vpack.c.bf16 %v31_v8, %v31_v8 }
  0x84   :  { %907 = vmatprep.subr.bf16.mxu0 %v2217_v12  ;;  %v2260_v12 = vld [vmem:[%s3202_s1 + $0x300] ss:$8 sps:$4 sm:$0xff]  }
  0x85   :  { %v2368_v8 = vld [vmem:[%s3204_s3 + $0x88] ss:$16 sps:$4 sm:$0xff]  }
  0x87   :  { %908 = vmatpush1.bf16.msra.mxu0 %v2215_v13  ;;  %v42_v13 = vpack.c.bf16 %v34_v10, %v34_v10  ;;  %v2371_v10 = vld [vmem:[%s3204_s3 + $0xa8] ss:$16 sps:$4 sm:$0xff]  }
  0x88   :  { %909 = vmatprep.subr.bf16.mxu0 %v2220_v14  ;;  %v2265_v14 = vld [vmem:[%s3202_s1 + $0x314] ss:$8 sps:$4 sm:$0xff]  }
  0x8b   :  { %910 = vmatpush1.bf16.msra.mxu0 %v2218_v18  ;;  %v2271_v18 = vld [vmem:[%s3202_s1 + $0x334] ss:$8 sps:$4 sm:$0xff]  }
  0x8c   :  { %911 = vmatprep.subr.bf16.mxu0 %v2223_v21  ;;  %v2272_v21 = vld [vmem:[%s3202_s1 + $0x340] ss:$8 sps:$4 sm:$0xff]  }
  0x8f   :  { %912 = vmatpush1.bf16.msra.mxu0 %v2221_v22  ;;  %v2277_v22 = vld [vmem:[%s3202_s1 + $0x354] ss:$8 sps:$4 sm:$0xff]  }
  0x90   :  { %913 = vmatprep.subr.bf16.mxu0 %v2226_v25  ;;  %v2278_v25 = vld [vmem:[%s3202_s1 + $0x360] ss:$8 sps:$4 sm:$0xff]  }
  0x93   :  { %914 = vmatpush1.bf16.msra.mxu0 %v2224_v26  ;;  %v2283_v26 = vld [vmem:[%s3202_s1 + $0x374] ss:$8 sps:$4 sm:$0xff]  }
  0x94   :  { %915 = vmatprep.subr.bf16.mxu0 %v2229_v29  ;;  %v2284_v29 = vld [vmem:[%s3202_s1 + $0x380] ss:$8 sps:$4 sm:$0xff]  }
  0x97   :  { %916 = vmatpush1.bf16.msra.mxu0 %v2227_v30  ;;  %v2289_v30 = vld [vmem:[%s3202_s1 + $0x394] ss:$8 sps:$4 sm:$0xff]  }
  0x98   :  { %917 = vmatprep.subr.bf16.mxu0 %v2232_v33  ;;  %v2290_v33 = vld [vmem:[%s3202_s1 + $0x3a0] ss:$8 sps:$4 sm:$0xff]  }
  0x9b   :  { %918 = vmatpush1.bf16.msra.mxu0 %v2230_v34  ;;  %v2295_v34 = vld [vmem:[%s3202_s1 + $0x3b4] ss:$8 sps:$4 sm:$0xff]  }
  0x9c   :  { %919 = vmatprep.subr.bf16.mxu0 %v2235_v35  ;;  %v2293_v35 = vld [vmem:[%s3202_s1 + $0x3b0] ss:$8 sps:$4 sm:$0xff]  }
  0x9f   :  { %920 = vmatpush1.bf16.msra.mxu0 %v2233_v39  ;;  %v2299_v39 = vld [vmem:[%s3202_s1 + $0x3d0] ss:$8 sps:$4 sm:$0xff]  }
  0xa0   :  { %921 = vmatprep.subr.bf16.mxu0 %v2238_v41  ;;  %v2302_v41 = vld [vmem:[%s3202_s1 + $0x3e0] ss:$8 sps:$4 sm:$0xff]  }
  0xa3   :  { %922 = vmatpush1.bf16.msra.mxu0 %v2236_v43  ;;  %v2305_v43 = vld [vmem:[%s3202_s1 + $0x3f0] ss:$8 sps:$4 sm:$0xff]  }
  0xa4   :  { %923 = vmatprep.subr.bf16.mxu0 %v2241_v45  ;;  %v41_v45 = vpack.c.bf16 %v33_v44, %v33_v44  ;;  %v2417_v44 = vld [vmem:[%s3205_s5 + $0x30] sm:$0xff]  }
  0xa7   :  { %924 = vmatpush1.bf16.msra.mxu0 %v2239_v47  ;;  %v2355_v47 = vld [vmem:[%s3204_s3 + $0x1e0] ss:$16 sps:$4 sm:$0xff]  }
  0xa8   :  { %925 = vmatprep.subr.bf16.mxu0 %v2244_v49  ;;  %1426 = vmatpush1.bf16.msra.mxu1 %v2355_v47  ;;  %v173_v49 = vlaneseq  ;;  %v2420_v47 = vld [vmem:[%s3205_s5 + $0xc0] sm:$0xff]  }
  0xa9   :  { %1436 = vmatprep.subr.bf16.mxu1 %v2358_v48  ;;  %v1053_v48 = vld [vmem:[%s3207_s4] sm:$0xf] }
  0xaa   :  { %v2983_v50 = vshrl.u32 %v173_v49, 7 }
  0xab   :  { %926 = vmatpush1.bf16.msra.mxu0 %v2242_v51 }
  0xac   :  { %927 = vmatprep.subr.bf16.mxu0 %v2247_v53  ;;  %v175_v51 = vsub.s32 0, %v2983_v50  ;;  %v179_v53 = vsub.s32 1, %v2983_v50 }
  0xae   :  { %v176_v54 = vrot.slane %v171_v52, %v175_v51  ;;  %v1058_v49 = vrot.slane %v1053_v48, %v175_v51  ;;  %v2422_v51 = vld [vmem:[%s3205_s5 + $0xc8] sm:$0xff]  }
  0xaf   :  { %928 = vmatpush1.bf16.msra.mxu0 %v2245_v55  ;;  %v180_v55 = vrot.slane %v171_v52, %v179_v53  ;;  %v1062_v52 = vrot.slane %v1053_v48, %v179_v53  ;;  %v2423_v53 = vld [vmem:[%s3205_s5 + $0x88] sm:$0xff]  }
  0xb0   :  { %929 = vmatprep.subr.bf16.mxu0 %v2250_v57 }
  0xb3   :  { %930 = vmatpush1.bf16.msra.mxu0 %v2248_v59 }
  0xb4   :  { %931 = vmatprep.subr.bf16.mxu0 %v2253_v61 }
  0xb7   :  { %932 = vmatpush1.bf16.msra.mxu0 %v2251_v63  ;;  %v2356_v63 = vld [vmem:[%s3204_s3 + $0x8] ss:$16 sps:$4 sm:$0xff]  }
  0xb8   :  { %933 = vmatprep.subr.bf16.mxu0 %v2256_v1  ;;  %v2361_v1 = vld [vmem:[%s3204_s3 + $0x2c] ss:$16 sps:$4 sm:$0xff]  }
  0xbb   :  { %934 = vmatpush1.bf16.msra.mxu0 %v2254_v3  ;;  %v2364_v3 = vld [vmem:[%s3204_s3 + $0x4c] ss:$16 sps:$4 sm:$0xff]  }
  0xbc   :  { %935 = vmatprep.subr.bf16.mxu0 %v2259_v5  ;;  %v2367_v5 = vld [vmem:[%s3204_s3 + $0x6c] ss:$16 sps:$4 sm:$0xff]  }
  0xbf   :  { %936 = vmatpush1.bf16.msra.mxu0 %v2257_v7  ;;  %v2370_v7 = vld [vmem:[%s3204_s3 + $0x8c] ss:$16 sps:$4 sm:$0xff]  }
  0xc0   :  { %946 = vmatprep.subr.bf16.mxu0 %v2262_v9  ;;  %v2373_v9 = vld [vmem:[%s3204_s3 + $0xac] ss:$16 sps:$4 sm:$0xff]  }
  0xc2   :  { %938 = vmatmul.mubr.bf16.vlgmr.msra.gmra.mrb[0].mxu0 %v39_v11  ;;  %v2376_v11 = vld [vmem:[%s3204_s3 + $0xcc] ss:$16 sps:$4 sm:$0xff]  }
  0xc3   :  { %947 = vmatpush1.bf16.msra.mxu0 %v2260_v12  ;;  %978 = vmatprep.mubr.bf16.mxu0 %v42_v13  ;;  %v2374_v12 = vld [vmem:[%s3204_s3 + $0xc8] ss:$16 sps:$4 sm:$0xff]   ;;  %v2379_v13 = vld [vmem:[%s3204_s3 + $0xec] ss:$16 sps:$4 sm:$0xff]  }
  0xc4   :  { %948 = vmatprep.subr.bf16.mxu0 %v2265_v14  ;;  %v2377_v14 = vld [vmem:[%s3204_s3 + $0xe8] ss:$16 sps:$4 sm:$0xff]  }
  0xc7   :  { %949 = vmatpush1.bf16.msra.mxu0 %v2263_v15  ;;  %v2382_v15 = vld [vmem:[%s3204_s3 + $0x10c] ss:$16 sps:$4 sm:$0xff]  }
  0xc8   :  { %950 = vmatprep.subr.bf16.mxu0 %v2268_v16  ;;  %v2380_v16 = vld [vmem:[%s3204_s3 + $0x108] ss:$16 sps:$4 sm:$0xff]  }
  0xcb   :  { %951 = vmatpush1.bf16.msra.mxu0 %v2266_v17  ;;  %v2385_v17 = vld [vmem:[%s3204_s3 + $0x12c] ss:$16 sps:$4 sm:$0xff]  }
  0xcc   :  { %952 = vmatprep.subr.bf16.mxu0 %v2271_v18  ;;  %v2383_v18 = vld [vmem:[%s3204_s3 + $0x128] ss:$16 sps:$4 sm:$0xff]  }
  0xcf   :  { %953 = vmatpush1.bf16.msra.mxu0 %v2269_v19  ;;  %v2388_v19 = vld [vmem:[%s3204_s3 + $0x14c] ss:$16 sps:$4 sm:$0xff]  }
  0xd0   :  { %954 = vmatprep.subr.bf16.mxu0 %v2274_v20  ;;  %v2386_v20 = vld [vmem:[%s3204_s3 + $0x148] ss:$16 sps:$4 sm:$0xff]  }
  0xd3   :  { %955 = vmatpush1.bf16.msra.mxu0 %v2272_v21  ;;  %v2391_v21 = vld [vmem:[%s3204_s3 + $0x16c] ss:$16 sps:$4 sm:$0xff]  }
  0xd4   :  { %956 = vmatprep.subr.bf16.mxu0 %v2277_v22  ;;  %v2389_v22 = vld [vmem:[%s3204_s3 + $0x168] ss:$16 sps:$4 sm:$0xff]  }
  0xd7   :  { %957 = vmatpush1.bf16.msra.mxu0 %v2275_v23  ;;  %v2394_v23 = vld [vmem:[%s3204_s3 + $0x18c] ss:$16 sps:$4 sm:$0xff]  }
  0xd8   :  { %958 = vmatprep.subr.bf16.mxu0 %v2280_v24  ;;  %v2392_v24 = vld [vmem:[%s3204_s3 + $0x188] ss:$16 sps:$4 sm:$0xff]  }
  0xdb   :  { %959 = vmatpush1.bf16.msra.mxu0 %v2278_v25  ;;  %v2397_v25 = vld [vmem:[%s3204_s3 + $0x1ac] ss:$16 sps:$4 sm:$0xff]  }
  0xdc   :  { %960 = vmatprep.subr.bf16.mxu0 %v2283_v26  ;;  %v2395_v26 = vld [vmem:[%s3204_s3 + $0x1a8] ss:$16 sps:$4 sm:$0xff]  }
  0xdf   :  { %961 = vmatpush1.bf16.msra.mxu0 %v2281_v27  ;;  %v2400_v27 = vld [vmem:[%s3204_s3 + $0x1cc] ss:$16 sps:$4 sm:$0xff]  }
  0xe0   :  { %962 = vmatprep.subr.bf16.mxu0 %v2286_v28  ;;  %v2398_v28 = vld [vmem:[%s3204_s3 + $0x1c8] ss:$16 sps:$4 sm:$0xff]  }
  0xe3   :  { %963 = vmatpush1.bf16.msra.mxu0 %v2284_v29  ;;  %v2403_v29 = vld [vmem:[%s3204_s3 + $0x1ec] ss:$16 sps:$4 sm:$0xff]  }
  0xe4   :  { %964 = vmatprep.subr.bf16.mxu0 %v2289_v30  ;;  %v2401_v30 = vld [vmem:[%s3204_s3 + $0x1e8] ss:$16 sps:$4 sm:$0xff]  }
  0xe7   :  { %965 = vmatpush1.bf16.msra.mxu0 %v2287_v31  ;;  %v2404_v31 = vld [vmem:[%s3205_s5 + $0x40] sm:$0xff]  }
  0xe8   :  { %966 = vmatprep.subr.bf16.mxu0 %v2292_v32  ;;  %v2405_v32 = vld [vmem:[%s3205_s5] sm:$0xff]  }
  0xeb   :  { %967 = vmatpush1.bf16.msra.mxu0 %v2290_v33  ;;  %v2406_v33 = vld [vmem:[%s3205_s5 + $0x48] sm:$0xff]  }
  0xec   :  { %968 = vmatprep.subr.bf16.mxu0 %v2295_v34  ;;  %v2407_v34 = vld [vmem:[%s3205_s5 + $0x8] sm:$0xff]  }
  0xef   :  { %969 = vmatpush1.bf16.msra.mxu0 %v2293_v35  ;;  %v2408_v35 = vld [vmem:[%s3205_s5 + $0x50] sm:$0xff]  }
  0xf0   :  { %970 = vmatprep.subr.bf16.mxu0 %v2298_v36  ;;  %v2409_v36 = vld [vmem:[%s3205_s5 + $0x10] sm:$0xff]  }
  0xf3   :  { %971 = vmatpush1.bf16.msra.mxu0 %v2296_v37  ;;  %v2410_v37 = vld [vmem:[%s3205_s5 + $0x58] sm:$0xff]  }
  0xf4   :  { %972 = vmatprep.subr.bf16.mxu0 %v2301_v38  ;;  %v2411_v38 = vld [vmem:[%s3205_s5 + $0x18] sm:$0xff]  }
  0xf7   :  { %973 = vmatpush1.bf16.msra.mxu0 %v2299_v39  ;;  %v2412_v39 = vld [vmem:[%s3205_s5 + $0x60] sm:$0xff]  }
  0xf8   :  { %974 = vmatprep.subr.bf16.mxu0 %v2304_v40  ;;  %v2413_v40 = vld [vmem:[%s3205_s5 + $0x20] sm:$0xff]  }
  0xfb   :  { %975 = vmatpush1.bf16.msra.mxu0 %v2302_v41  ;;  %v2414_v41 = vld [vmem:[%s3205_s5 + $0x68] sm:$0xff]  }
  0xfc   :  { %976 = vmatprep.subr.bf16.mxu0 %v2307_v42  ;;  %v2415_v42 = vld [vmem:[%s3205_s5 + $0x28] sm:$0xff]  }
  0xff   :  { %977 = vmatpush1.bf16.msra.mxu0 %v2305_v43  ;;  %v2416_v43 = vld [vmem:[%s3205_s5 + $0x70] sm:$0xff]  }
 0x102   :  { %979 = vmatmul.mubr.bf16.vlgmr.msra.gmra.mrb[0].mxu0 %v41_v45  ;;  %v2418_v45 = vld [vmem:[%s3205_s5 + $0x78] sm:$0xff]  }
 0x1d5   :  { %v980_v56 = vpop.f32.mrb[0].mxu0 }
 0x1d6   :  { %v2102_v57 = vadd.f32 %v980_v56, %v176_v54  ;;  %v982_v58 = vpop.f32.mrb[1].mxu0 }
 0x1d7   :  { %v2103_v59 = vadd.f32 %v982_v58, %v180_v55  ;;  %v984_v60 = vpop.f32.mrb[2].mxu0 }
 0x1d8   :  { %v985_v61 = vpop.f32.mrb[3].mxu0  ;;  %v2997_v0 = vpack.c.bf16 %v2102_v57, %v2102_v57 }
 0x1d9   :  { %v988_v62 = vpack.c.bf16 %v2103_v59, %v2103_v59 }
 0x1db   :  { %1427 = vmatprep.mubr.bf16.mxu1 %v988_v62 }
 0x1dc   :  { %1428 = vmatmul.mubr.bf16.vlgmr.msra.gmra.mrb[0].mxu1 %v2997_v0 }
 0x1dd   :  { %1437 = vmatpush1.bf16.msra.mxu1 %v2356_v63  ;;  %1468 = vmatprep.mubr.bf16.mxu1 %v988_v62  ;;  %v2421_v63 = vld [vmem:[%s3205_s5 + $0x80] sm:$0xff]  }
 0x1de   :  { %1438 = vmatprep.subr.bf16.mxu1 %v2361_v1  ;;  %v2424_v1 = vld [vmem:[%s3205_s5 + $0xd0] sm:$0xff]  }
 0x1e1   :  { %1439 = vmatpush1.bf16.msra.mxu1 %v2359_v2  ;;  %v2425_v2 = vld [vmem:[%s3205_s5 + $0x90] sm:$0xff]  }
 0x1e2   :  { %1440 = vmatprep.subr.bf16.mxu1 %v2364_v3  ;;  %v2426_v3 = vld [vmem:[%s3205_s5 + $0xd8] sm:$0xff]  }
 0x1e5   :  { %1441 = vmatpush1.bf16.msra.mxu1 %v2362_v4  ;;  %v2427_v4 = vld [vmem:[%s3205_s5 + $0x98] sm:$0xff]  }
 0x1e6   :  { %1442 = vmatprep.subr.bf16.mxu1 %v2367_v5  ;;  %v2428_v5 = vld [vmem:[%s3205_s5 + $0xe0] sm:$0xff]  }
 0x1e9   :  { %1443 = vmatpush1.bf16.msra.mxu1 %v2365_v6  ;;  %v2429_v6 = vld [vmem:[%s3205_s5 + $0xa0] sm:$0xff]  }
 0x1ea   :  { %1444 = vmatprep.subr.bf16.mxu1 %v2370_v7  ;;  %v2430_v7 = vld [vmem:[%s3205_s5 + $0xe8] sm:$0xff]  }
 0x1ed   :  { %1445 = vmatpush1.bf16.msra.mxu1 %v2368_v8  ;;  %v2431_v8 = vld [vmem:[%s3205_s5 + $0xa8] sm:$0xff]  }
 0x1ee   :  { %1446 = vmatprep.subr.bf16.mxu1 %v2373_v9  ;;  %v2432_v9 = vld [vmem:[%s3205_s5 + $0xf0] sm:$0xff]  }
 0x1f1   :  { %1447 = vmatpush1.bf16.msra.mxu1 %v2371_v10  ;;  %v2433_v10 = vld [vmem:[%s3205_s5 + $0xb0] sm:$0xff]  }
 0x1f2   :  { %1448 = vmatprep.subr.bf16.mxu1 %v2376_v11  ;;  %v2434_v11 = vld [vmem:[%s3205_s5 + $0xf8] sm:$0xff]  }
 0x1f5   :  { %1449 = vmatpush1.bf16.msra.mxu1 %v2374_v12  ;;  %v2435_v12 = vld [vmem:[%s3205_s5 + $0xb8] sm:$0xff]  }
 0x1f6   :  { %1450 = vmatprep.subr.bf16.mxu1 %v2379_v13  ;;  %v1065_v13 = vsub.s32 2, %v2983_v50 }
 0x1f9   :  { %1451 = vmatpush1.bf16.msra.mxu1 %v2377_v14  ;;  %v1069_v14 = vsub.s32 3, %v2983_v50  ;;  %v2025_v50 = vld [vmem:[%s3208_s6] ss:$0 sm:$0xff] }
 0x1fa   :  { %1452 = vmatprep.subr.bf16.mxu1 %v2382_v15  ;;  %v1066_v15 = vrot.slane %v1053_v48, %v1065_v13 }
 0x1fd   :  { %1453 = vmatpush1.bf16.msra.mxu1 %v2380_v16  ;;  %v1070_v16 = vrot.slane %v1053_v48, %v1069_v14 }
 0x1fe   :  { %1454 = vmatprep.subr.bf16.mxu1 %v2385_v17 }
 0x201   :  { %1455 = vmatpush1.bf16.msra.mxu1 %v2383_v18 }
 0x202   :  { %1456 = vmatprep.subr.bf16.mxu1 %v2388_v19 }
 0x205   :  { %1457 = vmatpush1.bf16.msra.mxu1 %v2386_v20 }
 0x206   :  { %1458 = vmatprep.subr.bf16.mxu1 %v2391_v21 }
 0x209   :  { %1459 = vmatpush1.bf16.msra.mxu1 %v2389_v22 }
 0x20a   :  { %1460 = vmatprep.subr.bf16.mxu1 %v2394_v23 }
 0x20d   :  { %1461 = vmatpush1.bf16.msra.mxu1 %v2392_v24 }
 0x20e   :  { %1462 = vmatprep.subr.bf16.mxu1 %v2397_v25 }
 0x211   :  { %1463 = vmatpush1.bf16.msra.mxu1 %v2395_v26 }
 0x212   :  { %1464 = vmatprep.subr.bf16.mxu1 %v2400_v27 }
 0x215   :  { %1465 = vmatpush1.bf16.msra.mxu1 %v2398_v28 }
 0x216   :  { %1466 = vmatprep.subr.bf16.mxu1 %v2403_v29 }
 0x219   :  { %1467 = vmatpush1.bf16.msra.mxu1 %v2401_v30 }
 0x21a   :  { %2058 = vmatprep.subr.bf16.mxu1 %v2404_v31 }
 0x21c   :  { %1469 = vmatmul.mubr.bf16.vlgmr.msra.gmra.mrb[4].mxu1 %v2997_v0 }
 0x21d   :  { %2059 = vmatpush3.bf16.msra.mxu1 %v2405_v32 }
 0x21e   :  { %2060 = vmatprep.subr.bf16.mxu1 %v2406_v33 }
 0x221   :  { %2061 = vmatpush3.bf16.msra.mxu1 %v2407_v34 }
 0x222   :  { %2062 = vmatprep.subr.bf16.mxu1 %v2408_v35 }
 0x225   :  { %2063 = vmatpush3.bf16.msra.mxu1 %v2409_v36 }
 0x226   :  { %2064 = vmatprep.subr.bf16.mxu1 %v2410_v37 }
 0x229   :  { %2065 = vmatpush3.bf16.msra.mxu1 %v2411_v38 }
 0x22a   :  { %2066 = vmatprep.subr.bf16.mxu1 %v2412_v39 }
 0x22d   :  { %2067 = vmatpush3.bf16.msra.mxu1 %v2413_v40 }
 0x22e   :  { %2068 = vmatprep.subr.bf16.mxu1 %v2414_v41 }
 0x231   :  { %2069 = vmatpush3.bf16.msra.mxu1 %v2415_v42 }
 0x232   :  { %2070 = vmatprep.subr.bf16.mxu1 %v2416_v43 }
 0x235   :  { %2071 = vmatpush3.bf16.msra.mxu1 %v2417_v44 }
 0x236   :  { %2072 = vmatprep.subr.bf16.mxu1 %v2418_v45 }
 0x239   :  { %2073 = vmatpush3.bf16.msra.mxu1 %v2419_v46 }
 0x23a   :  { %2080 = vmatprep.subr.bf16.mxu1 %v2420_v47 }
 0x2af   :  { %v1429_v54 = vpop.f32.mrb[0].mxu1 }
 0x2b0   :  { %v1430_v55 = vadd.f32 %v1429_v54, %v1058_v49  ;;  %v1431_v56 = vpop.f32.mrb[1].mxu1 }
 0x2b1   :  { %v1432_v57 = vadd.f32 %v1431_v56, %v1062_v52  ;;  %v1433_v58 = vpop.f32.mrb[2].mxu1 }
 0x2b2   :  { %v1477_v59 = vmax.f32 %v1430_v55, 0.0  ;;  %v1434_v60 = vpop.f32.mrb[3].mxu1 }
 0x2b3   :  { %v1478_v61 = vmax.f32 %v1432_v57, 0.0 }
 0x2b4   :  { %v1481_v0 = vpack.c.bf16 %v1477_v59, %v1477_v59 }
 0x2b5   :  { %v1482_v62 = vpack.c.bf16 %v1478_v61, %v1478_v61 }
 0x2b7   :  { %1780 = vmatprep.mubr.bf16.mxu1 %v1482_v62 }
 0x2b8   :  { %1781 = vmatmul.mubr.bf16.vlgmr.msra.gmra.mrb[8].mxu1 %v1481_v0 }
 0x2b9   :  { %2081 = vmatpush3.bf16.msra.mxu1 %v2421_v63 }
 0x2ba   :  { %2082 = vmatprep.subr.bf16.mxu1 %v2422_v51 }
 0x2bd   :  { %2083 = vmatpush3.bf16.msra.mxu1 %v2423_v53 }
 0x2be   :  { %2084 = vmatprep.subr.bf16.mxu1 %v2424_v1 }
 0x2c1   :  { %2085 = vmatpush3.bf16.msra.mxu1 %v2425_v2 }
 0x2c2   :  { %2086 = vmatprep.subr.bf16.mxu1 %v2426_v3 }
 0x2c5   :  { %2087 = vmatpush3.bf16.msra.mxu1 %v2427_v4 }
 0x2c6   :  { %2088 = vmatprep.subr.bf16.mxu1 %v2428_v5 }
 0x2c9   :  { %2089 = vmatpush3.bf16.msra.mxu1 %v2429_v6 }
 0x2ca   :  { %2090 = vmatprep.subr.bf16.mxu1 %v2430_v7 }
 0x2cd   :  { %2091 = vmatpush3.bf16.msra.mxu1 %v2431_v8 }
 0x2ce   :  { %2092 = vmatprep.subr.bf16.mxu1 %v2432_v9 }
 0x2d1   :  { %2093 = vmatpush3.bf16.msra.mxu1 %v2433_v10 }
 0x2d2   :  { %2094 = vmatprep.subr.bf16.mxu1 %v2434_v11 }
 0x2d5   :  { %2095 = vmatpush3.bf16.msra.mxu1 %v2435_v12 }
 0x2ef   :  { %v1470_v17 = vpop.f32.mrb[4].mxu1 }
 0x2f0   :  { %v1471_v18 = vadd.f32 %v1470_v17, %v1066_v15  ;;  %v1472_v19 = vpop.f32.mrb[5].mxu1 }
 0x2f1   :  { %v1473_v20 = vadd.f32 %v1472_v19, %v1070_v16  ;;  %v1474_v21 = vpop.f32.mrb[6].mxu1 }
 0x2f2   :  { %v1479_v22 = vmax.f32 %v1471_v18, 0.0  ;;  %v1475_v23 = vpop.f32.mrb[7].mxu1 }
 0x2f3   :  { %v1480_v24 = vmax.f32 %v1473_v20, 0.0 }
 0x2f4   :  { %v1483_v26 = vpack.c.bf16 %v1479_v22, %v1479_v22 }
 0x2f5   :  { %v1484_v25 = vpack.c.bf16 %v1480_v24, %v1480_v24 }
 0x2f7   :  { %1820 = vmatprep.mubr.bf16.mxu1 %v1484_v25 }
 0x2f8   :  { %1821 = vmatmul.mubr.bf16.vlgmr.msra.gmra.mrb[12].mxu1 %v1483_v26 }
 0x38b   :  { %v2074_v27 = vpop.f32.mrb[8].mxu1 }
 0x38c   :  { %v2075_v28 = vpop.f32.mrb[9].mxu1 }
 0x38d   :  { %v2076_v29 = vadd.f32 %v2075_v28, %v2074_v27  ;;  %v2077_v30 = vpop.f32.mrb[10].mxu1 }
 0x38e   :  { %v2078_v31 = vpop.f32.mrb[11].mxu1 }
 0x38f   :  { %v1783_v34 = vadd.f32 %v2076_v29, %v2025_v50 }
 0x3cb   :  { %v2096_v32 = vpop.f32.mrb[12].mxu1 }
 0x3cc   :  { %v2097_v33 = vpop.f32.mrb[13].mxu1 }
 0x3cd   :  { %v2098_v35 = vadd.f32 %v2097_v33, %v2096_v32  ;;  %v2099_v36 = vpop.f32.mrb[14].mxu1 }
 0x3ce   :  { %v2100_v37 = vpop.f32.mrb[15].mxu1 }
 0x3cf   :  { %v1823_v38 = vadd.f32 %v2098_v35, %v1783_v34 }
 0x3d1   :  { %1828 = vst [vmem:[%s3209_s7] sm:$0xff] %v1823_v38 }

</bundles_post_ra>
